<compile_context>
chip_gen: v5e
topology: v5e:2x2
jax: 0.10.0
libtpu: 0.0.40
codegen_flags: <defaults>
</compile_context>

<pallas_src>
import functools

import jax
import jax.numpy as jnp
from jax.experimental import pallas as pl
from jax.experimental.pallas import tpu as pltpu


def _round_up(x, m):
    return (x + m - 1) // m * m


def _round_down(x, m):
    return (x // m) * m


# ----------------------------------------------------------------------------
# Kernels
# ----------------------------------------------------------------------------
def _dqrp_kernel_single(xu_ref, w1_ref, b1_ref, w2_ref, b2_ref, o_ref,
                        *, activation):
    """Whole hidden dim resident in VMEM: fused Linear -> act -> Linear."""
    h = jnp.dot(xu_ref[...], w1_ref[...],
                preferred_element_type=jnp.float32) + b1_ref[...]
    h = jnp.maximum(h, 0.0)
    if activation == 'ReQU':
        h = h * h
    y = jnp.dot(h.astype(w2_ref.dtype), w2_ref[...],
                preferred_element_type=jnp.float32) + b2_ref[...]
    o_ref[...] = y.astype(o_ref.dtype)


def _dqrp_kernel_tiled(xu_ref, w1_ref, b1_ref, w2_ref, b2_ref, o_ref,
                       acc_ref, *, activation):
    """Hidden dim tiled along the last ("arbitrary") grid axis; f32 VMEM acc."""
    k = pl.program_id(1)

    @pl.when(k == 0)
    def _():
        acc_ref[...] = jnp.zeros_like(acc_ref)

    h = jnp.dot(xu_ref[...], w1_ref[...],
                preferred_element_type=jnp.float32) + b1_ref[...]
    h = jnp.maximum(h, 0.0)
    if activation == 'ReQU':
        h = h * h
    acc_ref[...] += jnp.dot(h.astype(w2_ref.dtype), w2_ref[...],
                            preferred_element_type=jnp.float32)

    @pl.when(k == pl.num_programs(1) - 1)
    def _():
        o_ref[...] = (acc_ref[...] + b2_ref[...]).astype(o_ref.dtype)


# ----------------------------------------------------------------------------
# Wrapper
# ----------------------------------------------------------------------------
def dqrp_forward(x, u, params, *, activation='ReLU', bm=None, bh=None,
                 compute_dtype=None, min_batch_tiles=1,
                 vmem_budget_bytes=None, input_buffers=2):
    """Pallas forward for DQRP.

    params = (W1, b1, W2, b2) in PyTorch Linear layout:
        W1: (hidden, dx+du), b1: (hidden,), W2: (out, hidden), b2: (out,)

    compute_dtype : optional (e.g. jnp.bfloat16) for the input/weight streams;
                    accumulation, biases and activation math stay f32.
    min_batch_tiles : set to 2 on v7x so the parallel batch axis uses both TCs.
    vmem_budget_bytes : default 48 MiB (safe under v7x 64 MiB); raise on
                    v5e/v6e (128 MiB physical) for bigger tiles.
    input_buffers : pipeline depth for the batch-streamed input (2 or 3).
    """
    w1, b1, w2, b2 = params
    B, dx = x.shape
    Bu, du = u.shape
    assert Bu == B
    dxu = dx + du
    hidden = w1.shape[0]
    out_dim = w2.shape[0]
    assert w1.shape[1] == dxu and w2.shape[1] == hidden
    assert activation in ('ReLU', 'ReQU')

    out_dtype = x.dtype
    cd = jnp.dtype(compute_dtype) if compute_dtype is not None else jnp.dtype(x.dtype)
    csz = cd.itemsize
    osz = jnp.dtype(out_dtype).itemsize
    mult = {4: 8, 2: 16, 1: 32}.get(csz, 8)     # sublane-packing multiple

    out_pad = _round_up(out_dim, 128)           # lane-dense unmasked stores

    if vmem_budget_bytes is None:
        vmem_budget_bytes = 48 << 20            # headroom under v7x 64 MiB
    headroom = 4 << 20

    # ---- accurate VMEM cost model ------------------------------------------
    def per_row_bytes(bh_blk, tiled):
        inbuf = max(2, int(input_buffers))
        cost = (inbuf * dxu * csz               # xu tile, pipelined
                + 2 * out_pad * osz             # output tile, double-buffered
                + bh_blk * 4                    # f32 hidden activation temp
                + out_pad * 4)                  # f32 matmul result temp
        if csz != 4:
            cost += bh_blk * csz                # cast copy of h for 2nd matmul
        if tiled:
            cost += out_pad * 4                 # f32 accumulator scratch
        return cost

    def weight_bytes(bh_blk, tiled):
        wbuf = 2                                # conservative: double-buffered
        return (wbuf * (dxu * bh_blk + bh_blk * out_pad) * csz
                + wbuf * 8 * bh_blk * 4         # b1 row (sublane-padded, f32)
                + 8 * out_pad * 4)              # b2 row

    # ---- hidden tiling decision --------------------------------------------
    tiled = False
    bh_eff = hidden
    if bh is not None and int(bh) < hidden:
        bh_eff = max(128, _round_up(int(bh), 128))
        tiled = bh_eff < hidden

    if not tiled:
        avail = vmem_budget_bytes - headroom - weight_bytes(hidden, False)
        bm_fit = _round_down(max(avail, 0) // per_row_bytes(hidden, False), mult)
        if bm_fit < mult and hidden > 256:
            tiled = True                        # whole hidden doesn't fit
            bh_eff = min(512, _round_down(hidden, 128))
        else:
            bm_fit = max(bm_fit, mult)
            bh_eff = hidden

    if tiled:
        hidden_pad = _round_up(hidden, bh_eff)
        n_k = hidden_pad // bh_eff
        avail = vmem_budget_bytes - headroom - weight_bytes(bh_eff, True)
        bm_fit = max(mult, _round_down(max(avail, 0)
                                       // per_row_bytes(bh_eff, True), mult))
    else:
        hidden_pad = hidden
        n_k = 1

    # ---- batch tile ---------------------------------------------------------
    bm_target = 2048 if bm is None else max(mult, _round_up(int(bm), mult))
    bm_eff = min(bm_target, bm_fit, _round_up(B, mult))
    if min_batch_tiles > 1:                     # v7x: shard across both TCs
        bm_eff = min(bm_eff,
                     max(mult, _round_up(pl.cdiv(B, int(min_batch_tiles)), mult)))
    bm_eff = max(mult, bm_eff)
    b_pad = _round_up(B, bm_eff)
    n_i = b_pad // bm_eff

    # ---- glue (plain JAX): concat once, transpose, zero-pad, cast ----------
    def pad2(a, shape):
        if tuple(a.shape) == tuple(shape):
            return a
        return jnp.zeros(shape, a.dtype).at[:a.shape[0], :a.shape[1]].set(a)

    xu = pad2(jnp.concatenate([x, u], axis=1).astype(cd), (b_pad, dxu))
    w1t = pad2(w1.T.astype(cd), (dxu, hidden_pad))
    w2t = pad2(w2.T.astype(cd), (hidden_pad, out_pad))
    b1r = pad2(b1.astype(jnp.float32).reshape(1, hidden), (1, hidden_pad))
    b2r = pad2(b2.astype(jnp.float32).reshape(1, out_dim), (1, out_pad))

    # ---- block specs / grid --------------------------------------------------
    inb = None if int(input_buffers) == 2 else pl.Buffered(int(input_buffers))

    def bspec(shape, imap, pmode=None):
        if pmode is None:
            return pl.BlockSpec(shape, imap)
        return pl.BlockSpec(shape, imap, pipeline_mode=pmode)

    if not tiled:
        kernel = functools.partial(_dqrp_kernel_single, activation=activation)
        grid = (n_i,)
        in_specs = [
            bspec((bm_eff, dxu), lambda i: (i, 0), inb),
            bspec((dxu, hidden_pad), lambda i: (0, 0)),
            bspec((1, hidden_pad), lambda i: (0, 0)),
            bspec((hidden_pad, out_pad), lambda i: (0, 0)),
            bspec((1, out_pad), lambda i: (0, 0)),
        ]
        out_specs = pl.BlockSpec((bm_eff, out_pad), lambda i: (i, 0))
        scratch_shapes = []
        dims = ("parallel",)
    else:
        kernel = functools.partial(_dqrp_kernel_tiled, activation=activation)
        grid = (n_i, n_k)                       # reduction (hidden) axis last
        in_specs = [
            bspec((bm_eff, dxu), lambda i, k: (i, 0), inb),
            bspec((dxu, bh_eff), lambda i, k: (0, k)),
            bspec((1, bh_eff), lambda i, k: (0, k)),
            bspec((bh_eff, out_pad), lambda i, k: (k, 0)),
            bspec((1, out_pad), lambda i, k: (0, 0)),
        ]
        out_specs = pl.BlockSpec((bm_eff, out_pad), lambda i, k: (i, 0))
        scratch_shapes = [pltpu.VMEM((bm_eff, out_pad), jnp.float32)]
        dims = ("parallel", "arbitrary")

    est = weight_bytes(bh_eff, tiled) + bm_eff * per_row_bytes(bh_eff, tiled)
    vmem_limit = int(min(vmem_budget_bytes, max(32 << 20, est + headroom)))

    out = pl.pallas_call(
        kernel,
        out_shape=jax.ShapeDtypeStruct((b_pad, out_pad), out_dtype),
        grid_spec=pltpu.PrefetchScalarGridSpec(
            num_scalar_prefetch=0,
            grid=grid,
            in_specs=in_specs,
            out_specs=out_specs,
            scratch_shapes=scratch_shapes),
        compiler_params=pltpu.CompilerParams(
            dimension_semantics=dims,
            vmem_limit_bytes=vmem_limit),
    )(xu, w1t, b1r, w2t, b2r)

    if b_pad == B and out_pad == out_dim:
        return out                              # no slice copy needed
    return out[:B, :out_dim]


# ----------------------------------------------------------------------------
# Pure-JAX reference (matches the PyTorch module)
# ----------------------------------------------------------------------------
def dqrp_reference(x, u, params, *, activation='ReLU'):
    w1, b1, w2, b2 = params
    xu = jnp.concatenate([x, u], axis=1)
    h = xu @ w1.T + b1
    h = jnp.maximum(h, 0.0)
    if activation == 'ReQU':
        h = h * h
    return h @ w2.T + b2


if __name__ == "__main__":
    key = jax.random.PRNGKey(0)

    def make_params(k, dxu, hidden, out_dim):
        kw1, kb1, kw2, kb2 = jax.random.split(k, 4)
        w1 = jax.random.normal(kw1, (hidden, dxu), jnp.float32) * 0.1
        b1 = jax.random.normal(kb1, (hidden,), jnp.float32) * 0.1
        w2 = jax.random.normal(kw2, (out_dim, hidden), jnp.float32) * 0.1
        b2 = jax.random.normal(kb2, (out_dim,), jnp.float32) * 0.1
        return (w1, b1, w2, b2)

    kx, ku, kp1, kp2, kp3 = jax.random.split(key, 5)

    # Config 1: module default widths [256, 256, 256] (dx=du=128), ReLU.
    # out_pad == out_dim and b_pad == B -> no trailing slice copy.
    B, dx, du = 64, 128, 128
    hidden, out_dim = 256, 256
    x = jax.random.normal(kx, (B, dx), jnp.float32)
    u = jax.random.normal(ku, (B, du), jnp.float32)
    params = make_params(kp1, dx + du, hidden, out_dim)
    out = jax.block_until_ready(dqrp_forward(x, u, params, activation='ReLU'))
    ref = dqrp_reference(x, u, params, activation='ReLU')
    assert out.shape == (B, out_dim)
    assert jnp.allclose(out, ref, atol=2e-2, rtol=2e-2), \
        float(jnp.max(jnp.abs(out - ref)))

    # Config 2: ReQU, ragged batch (48) and narrow output (32 -> padded 128).
    B2, dx2, du2, hid2, out2 = 48, 16, 16, 64, 32
    x2 = jax.random.normal(kx, (B2, dx2), jnp.float32)
    u2 = jax.random.normal(ku, (B2, du2), jnp.float32)
    params2 = make_params(kp2, dx2 + du2, hid2, out2)
    y2 = jax.block_until_ready(dqrp_forward(x2, u2, params2, activation='ReQU'))
    ref2 = dqrp_reference(x2, u2, params2, activation='ReQU')
    assert y2.shape == (B2, out2)
    assert jnp.allclose(y2, ref2, atol=2e-2, rtol=2e-2), \
        float(jnp.max(jnp.abs(y2 - ref2)))

    # Config 3: forced hidden tiling (bh=128 over hidden=256) -> exercises the
    # "arbitrary" reduction axis + f32 VMEM accumulator path.
    B3, hid3, out3 = 32, 256, 32
    x3 = jax.random.normal(kx, (B3, dx2), jnp.float32)
    u3 = jax.random.normal(ku, (B3, du2), jnp.float32)
    params3 = make_params(kp3, dx2 + du2, hid3, out3)
    y3 = jax.block_until_ready(
        dqrp_forward(x3, u3, params3, activation='ReQU', bh=128))
    ref3 = dqrp_reference(x3, u3, params3, activation='ReQU')
    assert y3.shape == (B3, out3)
    assert jnp.allclose(y3, ref3, atol=2e-2, rtol=2e-2), \
        float(jnp.max(jnp.abs(y3 - ref3)))

    # Config 4: bf16 streams (f32 accumulation) + batch split into 2 tiles
    # (the v7x megacore knob) -> multi-step "parallel" grid.
    y4 = jax.block_until_ready(
        dqrp_forward(x, u, params, activation='ReLU',
                     compute_dtype=jnp.bfloat16, min_batch_tiles=2))
    assert y4.shape == (B, out_dim)
    assert jnp.allclose(y4, ref, atol=1e-1, rtol=1e-1), \
        float(jnp.max(jnp.abs(y4 - ref)))

    print("KERNEL_OK")
</pallas_src>

<mosaic_0001>
module attributes {stable_mosaic.version = 11 : i64} {
  func.func @_dqrp_kernel_single(%arg0: i32, %arg1: memref<64x256xf32, #tpu.memory_space<vmem>>, %arg2: memref<256x256xf32, #tpu.memory_space<vmem>>, %arg3: memref<1x256xf32, #tpu.memory_space<vmem>>, %arg4: memref<256x256xf32, #tpu.memory_space<vmem>>, %arg5: memref<1x256xf32, #tpu.memory_space<vmem>>, %arg6: memref<64x256xf32, #tpu.memory_space<vmem>>) attributes {dimension_semantics = [#tpu.dimension_semantics<parallel>], iteration_bounds = array<i64: 1>, scalar_prefetch = 0 : i64, scratch_operands = 0 : i64, tpu.core_type = #tpu.core_type<tc>, window_params = [{transform_indices = @transform_0, window_bounds = array<i64: 64, 256>}, {pipeline_mode = #tpu.pipeline_mode<synchronous>, transform_indices = @transform_1, window_bounds = array<i64: 256, 256>}, {pipeline_mode = #tpu.pipeline_mode<synchronous>, transform_indices = @transform_2, window_bounds = array<i64: 1, 256>}, {pipeline_mode = #tpu.pipeline_mode<synchronous>, transform_indices = @transform_3, window_bounds = array<i64: 256, 256>}, {pipeline_mode = #tpu.pipeline_mode<synchronous>, transform_indices = @transform_4, window_bounds = array<i64: 1, 256>}, {transform_indices = @transform_5, window_bounds = array<i64: 64, 256>}]} {
    %c0 = arith.constant 0 : index
    %c0_0 = arith.constant 0 : index
    %0 = vector.load %arg1[%c0, %c0_0] : memref<64x256xf32, #tpu.memory_space<vmem>>, vector<64x256xf32>
    %c0_1 = arith.constant 0 : index
    %c0_2 = arith.constant 0 : index
    %1 = vector.load %arg2[%c0_1, %c0_2] : memref<256x256xf32, #tpu.memory_space<vmem>>, vector<256x256xf32>
    %cst = arith.constant dense<0.000000e+00> : vector<64x256xf32>
    %2 = tpu.matmul %0, %1, %cst {dimension_numbers = #tpu.dot_dimension_numbers<[1], [0], [0], [1], [0, 0, 1, 1], [], []>} : vector<64x256xf32>, vector<256x256xf32>, vector<64x256xf32> -> vector<64x256xf32>
    %c0_3 = arith.constant 0 : index
    %c0_4 = arith.constant 0 : index
    %3 = vector.load %arg3[%c0_3, %c0_4] : memref<1x256xf32, #tpu.memory_space<vmem>>, vector<1x256xf32>
    %4 = vector.broadcast %3 : vector<1x256xf32> to vector<64x256xf32>
    %5 = arith.addf %2, %4 : vector<64x256xf32>
    %cst_5 = arith.constant 0.000000e+00 : f32
    %6 = vector.broadcast %cst_5 : f32 to vector<64x256xf32>
    %7 = arith.maximumf %5, %6 : vector<64x256xf32>
    %c0_6 = arith.constant 0 : index
    %c0_7 = arith.constant 0 : index
    %8 = vector.load %arg4[%c0_6, %c0_7] : memref<256x256xf32, #tpu.memory_space<vmem>>, vector<256x256xf32>
    %cst_8 = arith.constant dense<0.000000e+00> : vector<64x256xf32>
    %9 = tpu.matmul %7, %8, %cst_8 {dimension_numbers = #tpu.dot_dimension_numbers<[1], [0], [0], [1], [0, 0, 1, 1], [], []>} : vector<64x256xf32>, vector<256x256xf32>, vector<64x256xf32> -> vector<64x256xf32>
    %c0_9 = arith.constant 0 : index
    %c0_10 = arith.constant 0 : index
    %10 = vector.load %arg5[%c0_9, %c0_10] : memref<1x256xf32, #tpu.memory_space<vmem>>, vector<1x256xf32>
    %11 = vector.broadcast %10 : vector<1x256xf32> to vector<64x256xf32>
    %12 = arith.addf %9, %11 : vector<64x256xf32>
    %c0_11 = arith.constant 0 : index
    %c0_12 = arith.constant 0 : index
    %13 = vector.load %arg6[%c0_11, %c0_12] : memref<64x256xf32, #tpu.memory_space<vmem>>, vector<64x256xf32>
    tpu.vector_store %arg6[%c0_11, %c0_12], %12 {strides = array<i32>} : memref<64x256xf32, #tpu.memory_space<vmem>>, vector<64x256xf32>,
    return
  }
  func.func @transform_0(%arg0: i32) -> (i32, i32) {
    %c0_i32 = arith.constant 0 : i32
    %c0_i32_0 = arith.constant 0 : i32
    return %arg0, %c0_i32 : i32, i32
  }
  func.func @transform_1(%arg0: i32) -> (i32, i32) {
    %c0_i32 = arith.constant 0 : i32
    %c0_i32_0 = arith.constant 0 : i32
    %c0_i32_1 = arith.constant 0 : i32
    return %c0_i32, %c0_i32_0 : i32, i32
  }
  func.func @transform_2(%arg0: i32) -> (i32, i32) {
    %c0_i32 = arith.constant 0 : i32
    %c0_i32_0 = arith.constant 0 : i32
    %c0_i32_1 = arith.constant 0 : i32
    return %c0_i32, %c0_i32_0 : i32, i32
  }
  func.func @transform_3(%arg0: i32) -> (i32, i32) {
    %c0_i32 = arith.constant 0 : i32
    %c0_i32_0 = arith.constant 0 : i32
    %c0_i32_1 = arith.constant 0 : i32
    return %c0_i32, %c0_i32_0 : i32, i32
  }
  func.func @transform_4(%arg0: i32) -> (i32, i32) {
    %c0_i32 = arith.constant 0 : i32
    %c0_i32_0 = arith.constant 0 : i32
    %c0_i32_1 = arith.constant 0 : i32
    return %c0_i32, %c0_i32_0 : i32, i32
  }
  func.func @transform_5(%arg0: i32) -> (i32, i32) {
    %c0_i32 = arith.constant 0 : i32
    %c0_i32_0 = arith.constant 0 : i32
    return %arg0, %c0_i32 : i32, i32
  }
}

</mosaic_0001>

<bundles_post_ra>
// kernel: tpu_custom_call.1
= control target key start
LH: loop header
LB: loop body
LE: loop exit
PB: predicated region body
PF: predicated region fallthrough
CT: control target
= control target key end

     0   :  { %10 = vsyncpa [#allocation3], 0  ;;  %s861_s0 = inlined_call_operand.hbm [shape: f32[64,256], index: 0, kind: input, shape index: {}]   ;;  %s862_s1 = inlined_call_operand.hbm [shape: f32[256,256], index: 1, kind: input, shape index: {}]   ;;  %s863_s2 = inlined_call_operand.hbm [shape: f32[1,256], index: 2, kind: input, shape index: {}]   ;;  %s864_s3 = inlined_call_operand.hbm [shape: f32[256,256], index: 3, kind: input, shape index: {}]   ;;  %s865_s4 = inlined_call_operand.vmem [shape: f32[1,256], index: 4, kind: input, shape index: {}]   ;;  %s866_s5 = inlined_call_operand.hbm [shape: f32[64,256], index: 5, kind: output, shape index: {}]  }
   0x1   :  { %11 = vsyncpa [#allocation6], 0 }
   0x2   :  { %12 = vsyncpa [#allocation9], 0 }
   0x3   :  { %13 = vsyncpa [#allocation4], 0  ;;  %s31_s20 = sshll.u32 %s862_s1, 4  ;;  %s754_s21 = smov [#allocation5]   ;;  %s32_s20 = int_to_ptr.hbm [resolvable:$true] %s31_s20 }
   0x4   :  { %s33_s22 = sshll.u32 %s754_s21, 4  ;;  %s18_s25 = sshll.u32 %s861_s0, 4  ;;  %s34_s22 = int_to_ptr.vmem [resolvable:$true] %s33_s22  ;;  %s19_s25 = int_to_ptr.hbm [resolvable:$true] %s18_s25 }
   0x5   :  { %s755_s26 = smov 256   ;;  %s756_s27 = smov 16  }
   0x6   :  { %39 = dma.hbm_to_vmem [thread:$0]  %s32_s20, 8192, %s34_s22, [#allocation6], %s755_s26, %s755_s26, %s756_s27  }
   0x7   :  { %s757_s28 = smov [#allocation2]   ;;  %s45_s1 = sshll.u32 %s863_s2, 4  ;;  %s46_s1 = int_to_ptr.hbm [resolvable:$true] %s45_s1 }
   0x8   :  { %s20_s29 = sshll.u32 %s757_s28, 4  ;;  %s55_s8 = sshll.u32 %s864_s3, 4  ;;  %s21_s29 = int_to_ptr.vmem [resolvable:$true] %s20_s29  ;;  %s56_s8 = int_to_ptr.hbm [resolvable:$true] %s55_s8 }
   0x9   :  { %26 = dma.hbm_to_vmem [thread:$0]  %s19_s25, 2048, %s21_s29, [#allocation3], %s755_s26, %s755_s26, %s756_s27  }
   0xa   :  { %s758_s9 = smov [#allocation7]   ;;  %s759_s11 = smov [#allocation8]  }
   0xb   :  { %s47_s10 = sshll.u32 %s758_s9, 4  ;;  %s57_s12 = sshll.u32 %s759_s11, 4  ;;  %s48_s10 = int_to_ptr.vmem [resolvable:$true] %s47_s10  ;;  %s58_s12 = int_to_ptr.vmem [resolvable:$true] %s57_s12 }
   0xc   :  { %50 = dma.hbm_to_vmem [thread:$0]  %s46_s1, 32, %s48_s10, [#allocation6]  }
   0xd   :  { %63 = dma.hbm_to_vmem [thread:$0]  %s56_s8, 8192, %s58_s12, [#allocation9], %s755_s26, %s755_s26, %s756_s27  }
   0xe   :  { %746 = dma.done.wait [#allocation3], 2048  }
   0xf   :  { %747 = vsyncadd [#allocation3], 4294965248 }
  0x10   :  { %748 = dma.done.wait [#allocation6], 8224  }
  0x11   :  { %749 = vsyncadd [#allocation6], 4294959072 }
  0x12   :  { %750 = dma.done.wait [#allocation9], 8192  }
  0x13   :  { %751 = vsyncadd [#allocation9], 4294959104  ;;  %v129_v0 = vld [vmem:[#allocation5 + $0xf8] sm:$0xff]  ;;  %v127_v1 = vld [vmem:[#allocation5 + $0xe8] sm:$0xff]  ;;  %s604_s16 = sshll.u32 %s866_s5, 4  ;;  %s605_s16 = int_to_ptr.hbm [resolvable:$true] %s604_s16 }
  0x14   :  { %v161_v2 = vld [vmem:[#allocation5 + $0x1f8] sm:$0xff]  ;;  %250 = vmatpush.msra.mxu2 %v129_v0  ;;  %v128_v3 = vld [vmem:[#allocation5 + $0xf0] sm:$0xff]  ;;  %v159_v4 = vld [vmem:[#allocation5 + $0x1e8] sm:$0xff] }
  0x15   :  { %291 = vmatpush.msra.mxu3 %v161_v2  ;;  %168 = vmatpush.msra.mxu0 %v128_v3  ;;  %v125_v5 = vld [vmem:[#allocation5 + $0xd8] sm:$0xff]  ;;  %v126_v6 = vld [vmem:[#allocation5 + $0xe0] sm:$0xff]  ;;  %v160_v7 = vld [vmem:[#allocation5 + $0x1f0] sm:$0xff] }
  0x16   :  { %251 = vmatpush.msra.mxu2 %v127_v1  ;;  %v157_v8 = vld [vmem:[#allocation5 + $0x1d8] sm:$0xff]  ;;  %v124_v9 = vld [vmem:[#allocation5 + $0xd0] sm:$0xff]  ;;  %v158_v10 = vld [vmem:[#allocation5 + $0x1e0] sm:$0xff]  ;;  %209 = vmatpush.msra.mxu1 %v160_v7 }
  0x17   :  { %292 = vmatpush.msra.mxu3 %v159_v4  ;;  %169 = vmatpush.msra.mxu0 %v126_v6  ;;  %v123_v11 = vld [vmem:[#allocation5 + $0xc8] sm:$0xff]  ;;  %v122_v13 = vld [vmem:[#allocation5 + $0xc0] sm:$0xff]  ;;  %v156_v14 = vld [vmem:[#allocation5 + $0x1d0] sm:$0xff] }
  0x18   :  { %v155_v12 = vld [vmem:[#allocation5 + $0x1c8] sm:$0xff]  ;;  %252 = vmatpush.msra.mxu2 %v125_v5  ;;  %210 = vmatpush.msra.mxu1 %v158_v10  ;;  %v121_v15 = vld [vmem:[#allocation5 + $0xb8] sm:$0xff]  ;;  %v120_v17 = vld [vmem:[#allocation5 + $0xb0] sm:$0xff] }
  0x19   :  { %293 = vmatpush.msra.mxu3 %v157_v8  ;;  %170 = vmatpush.msra.mxu0 %v124_v9  ;;  %v153_v16 = vld [vmem:[#allocation5 + $0x1b8] sm:$0xff]  ;;  %v154_v18 = vld [vmem:[#allocation5 + $0x1c0] sm:$0xff]  ;;  %v119_v19 = vld [vmem:[#allocation5 + $0xa8] sm:$0xff] }
  0x1a   :  { %253 = vmatpush.msra.mxu2 %v123_v11  ;;  %211 = vmatpush.msra.mxu1 %v156_v14  ;;  %v151_v20 = vld [vmem:[#allocation5 + $0x1a8] sm:$0xff]  ;;  %v118_v21 = vld [vmem:[#allocation5 + $0xa0] sm:$0xff]  ;;  %v152_v22 = vld [vmem:[#allocation5 + $0x1b0] sm:$0xff] }
  0x1b   :  { %294 = vmatpush.msra.mxu3 %v155_v12  ;;  %171 = vmatpush.msra.mxu0 %v122_v13  ;;  %v117_v23 = vld [vmem:[#allocation5 + $0x98] sm:$0xff]  ;;  %v116_v25 = vld [vmem:[#allocation5 + $0x90] sm:$0xff]  ;;  %v150_v26 = vld [vmem:[#allocation5 + $0x1a0] sm:$0xff] }
  0x1c   :  { %254 = vmatpush.msra.mxu2 %v121_v15  ;;  %212 = vmatpush.msra.mxu1 %v154_v18  ;;  %v149_v24 = vld [vmem:[#allocation5 + $0x198] sm:$0xff]  ;;  %v115_v27 = vld [vmem:[#allocation5 + $0x88] sm:$0xff]  ;;  %v114_v29 = vld [vmem:[#allocation5 + $0x80] sm:$0xff] }
  0x1d   :  { %295 = vmatpush.msra.mxu3 %v153_v16  ;;  %172 = vmatpush.msra.mxu0 %v120_v17  ;;  %v147_v28 = vld [vmem:[#allocation5 + $0x188] sm:$0xff]  ;;  %v148_v30 = vld [vmem:[#allocation5 + $0x190] sm:$0xff]  ;;  %v113_v31 = vld [vmem:[#allocation5 + $0x78] sm:$0xff] }
  0x1e   :  { %255 = vmatpush.msra.mxu2 %v119_v19  ;;  %213 = vmatpush.msra.mxu1 %v152_v22  ;;  %v145_v32 = vld [vmem:[#allocation5 + $0x178] sm:$0xff]  ;;  %v112_v33 = vld [vmem:[#allocation5 + $0x70] sm:$0xff]  ;;  %v146_v34 = vld [vmem:[#allocation5 + $0x180] sm:$0xff] }
  0x1f   :  { %296 = vmatpush.msra.mxu3 %v151_v20  ;;  %173 = vmatpush.msra.mxu0 %v118_v21  ;;  %v111_v35 = vld [vmem:[#allocation5 + $0x68] sm:$0xff]  ;;  %v110_v37 = vld [vmem:[#allocation5 + $0x60] sm:$0xff]  ;;  %v144_v38 = vld [vmem:[#allocation5 + $0x170] sm:$0xff] }
  0x20   :  { %256 = vmatpush.msra.mxu2 %v117_v23  ;;  %214 = vmatpush.msra.mxu1 %v150_v26  ;;  %v143_v36 = vld [vmem:[#allocation5 + $0x168] sm:$0xff]  ;;  %v109_v39 = vld [vmem:[#allocation5 + $0x58] sm:$0xff]  ;;  %v108_v41 = vld [vmem:[#allocation5 + $0x50] sm:$0xff] }
  0x21   :  { %297 = vmatpush.msra.mxu3 %v149_v24  ;;  %174 = vmatpush.msra.mxu0 %v116_v25  ;;  %v141_v40 = vld [vmem:[#allocation5 + $0x158] sm:$0xff]  ;;  %v142_v42 = vld [vmem:[#allocation5 + $0x160] sm:$0xff]  ;;  %v107_v43 = vld [vmem:[#allocation5 + $0x48] sm:$0xff] }
  0x22   :  { %257 = vmatpush.msra.mxu2 %v115_v27  ;;  %215 = vmatpush.msra.mxu1 %v148_v30  ;;  %v139_v44 = vld [vmem:[#allocation5 + $0x148] sm:$0xff]  ;;  %v106_v45 = vld [vmem:[#allocation5 + $0x40] sm:$0xff]  ;;  %v140_v46 = vld [vmem:[#allocation5 + $0x150] sm:$0xff] }
  0x23   :  { %298 = vmatpush.msra.mxu3 %v147_v28  ;;  %175 = vmatpush.msra.mxu0 %v114_v29  ;;  %v105_v47 = vld [vmem:[#allocation5 + $0x38] sm:$0xff]  ;;  %v104_v49 = vld [vmem:[#allocation5 + $0x30] sm:$0xff]  ;;  %v138_v50 = vld [vmem:[#allocation5 + $0x140] sm:$0xff] }
  0x24   :  { %258 = vmatpush.msra.mxu2 %v113_v31  ;;  %216 = vmatpush.msra.mxu1 %v146_v34  ;;  %v137_v48 = vld [vmem:[#allocation5 + $0x138] sm:$0xff]  ;;  %v103_v51 = vld [vmem:[#allocation5 + $0x28] sm:$0xff]  ;;  %v102_v53 = vld [vmem:[#allocation5 + $0x20] sm:$0xff] }
  0x25   :  { %299 = vmatpush.msra.mxu3 %v145_v32  ;;  %176 = vmatpush.msra.mxu0 %v112_v33  ;;  %v135_v52 = vld [vmem:[#allocation5 + $0x128] sm:$0xff]  ;;  %v136_v54 = vld [vmem:[#allocation5 + $0x130] sm:$0xff]  ;;  %v101_v55 = vld [vmem:[#allocation5 + $0x18] sm:$0xff] }
  0x26   :  { %259 = vmatpush.msra.mxu2 %v111_v35  ;;  %217 = vmatpush.msra.mxu1 %v144_v38  ;;  %v133_v56 = vld [vmem:[#allocation5 + $0x118] sm:$0xff]  ;;  %v100_v57 = vld [vmem:[#allocation5 + $0x10] sm:$0xff]  ;;  %v134_v58 = vld [vmem:[#allocation5 + $0x120] sm:$0xff] }
  0x27   :  { %300 = vmatpush.msra.mxu3 %v143_v36  ;;  %177 = vmatpush.msra.mxu0 %v110_v37  ;;  %v99_v59 = vld [vmem:[#allocation5 + $0x8] sm:$0xff]  ;;  %v82_v61 = vld [vmem:[#allocation2] sm:$0xff]  ;;  %v132_v0 = vld [vmem:[#allocation5 + $0x110] sm:$0xff] }
  0x28   :  { %260 = vmatpush.msra.mxu2 %v109_v39  ;;  %218 = vmatpush.msra.mxu1 %v142_v42  ;;  %v131_v60 = vld [vmem:[#allocation5 + $0x108] sm:$0xff]  ;;  %v98_v63 = vld [vmem:[#allocation5] sm:$0xff]  ;;  %v84_v2 = vld [vmem:[#allocation2 + $0x10] sm:$0xff] }
  0x29   :  { %301 = vmatpush.msra.mxu3 %v141_v40  ;;  %178 = vmatpush.msra.mxu0 %v108_v41  ;;  %v83_v62 = vld [vmem:[#allocation2 + $0x8] sm:$0xff]  ;;  %v130_v1 = vld [vmem:[#allocation5 + $0x100] sm:$0xff]  ;;  %v85_v3 = vld [vmem:[#allocation2 + $0x18] sm:$0xff] }
  0x2a   :  { %261 = vmatpush.msra.mxu2 %v107_v43  ;;  %219 = vmatpush.msra.mxu1 %v140_v46  ;;  %v86_v4 = vld [vmem:[#allocation2 + $0x20] sm:$0xff]  ;;  %v87_v5 = vld [vmem:[#allocation2 + $0x28] sm:$0xff]  ;;  %v88_v6 = vld [vmem:[#allocation2 + $0x30] sm:$0xff] }
  0x2b   :  { %302 = vmatpush.msra.mxu3 %v139_v44  ;;  %179 = vmatpush.msra.mxu0 %v106_v45  ;;  %v89_v7 = vld [vmem:[#allocation2 + $0x38] sm:$0xff]  ;;  %v90_v8 = vld [vmem:[#allocation2 + $0x40] sm:$0xff]  ;;  %v91_v9 = vld [vmem:[#allocation2 + $0x48] sm:$0xff] }
  0x2c   :  { %262 = vmatpush.msra.mxu2 %v105_v47  ;;  %220 = vmatpush.msra.mxu1 %v138_v50  ;;  %v379_v10 = vld [vmem:[#allocation8 + $0xf8] sm:$0xff]  ;;  %v377_v12 = vld [vmem:[#allocation8 + $0xe8] sm:$0xff]  ;;  %v378_v13 = vld [vmem:[#allocation8 + $0xf0] sm:$0xff] }
  0x2d   :  { %303 = vmatpush.msra.mxu3 %v137_v48  ;;  %180 = vmatpush.msra.mxu0 %v104_v49  ;;  %v411_v11 = vld [vmem:[#allocation8 + $0x1f8] sm:$0xff]  ;;  %v409_v14 = vld [vmem:[#allocation8 + $0x1e8] sm:$0xff]  ;;  %v410_v15 = vld [vmem:[#allocation8 + $0x1f0] sm:$0xff] }
  0x2e   :  { %263 = vmatpush.msra.mxu2 %v103_v51  ;;  %221 = vmatpush.msra.mxu1 %v136_v54  ;;  %v375_v16 = vld [vmem:[#allocation8 + $0xd8] sm:$0xff]  ;;  %v376_v17 = vld [vmem:[#allocation8 + $0xe0] sm:$0xff]  ;;  %v373_v20 = vld [vmem:[#allocation8 + $0xc8] sm:$0xff] }
  0x2f   :  { %304 = vmatpush.msra.mxu3 %v135_v52  ;;  %181 = vmatpush.msra.mxu0 %v102_v53  ;;  %v407_v18 = vld [vmem:[#allocation8 + $0x1d8] sm:$0xff]  ;;  %v408_v19 = vld [vmem:[#allocation8 + $0x1e0] sm:$0xff]  ;;  %v374_v21 = vld [vmem:[#allocation8 + $0xd0] sm:$0xff] }
  0x30   :  { %264 = vmatpush.msra.mxu2 %v101_v55  ;;  %222 = vmatpush.msra.mxu1 %v134_v58  ;;  %v405_v22 = vld [vmem:[#allocation8 + $0x1c8] sm:$0xff]  ;;  %v406_v23 = vld [vmem:[#allocation8 + $0x1d0] sm:$0xff]  ;;  %v371_v24 = vld [vmem:[#allocation8 + $0xb8] sm:$0xff] }
  0x31   :  { %305 = vmatpush.msra.mxu3 %v133_v56  ;;  %182 = vmatpush.msra.mxu0 %v100_v57  ;;  %v372_v25 = vld [vmem:[#allocation8 + $0xc0] sm:$0xff]  ;;  %v403_v26 = vld [vmem:[#allocation8 + $0x1b8] sm:$0xff]  ;;  %v92_v28 = vld [vmem:[#allocation2 + $0x50] sm:$0xff] }
  0x32   :  { %265 = vmatpush.msra.mxu2 %v99_v59  ;;  %223 = vmatpush.msra.mxu1 %v132_v0  ;;  %v404_v27 = vld [vmem:[#allocation8 + $0x1c0] sm:$0xff]  ;;  %v93_v29 = vld [vmem:[#allocation2 + $0x58] sm:$0xff]  ;;  %v369_v30 = vld [vmem:[#allocation8 + $0xa8] sm:$0xff] }
  0x33   :  { %306 = vmatpush.msra.mxu3 %v131_v60  ;;  %266 = vmatmul.f32.vlgmr.msra.gmra.mxu2 %v82_v61  ;;  %v370_v31 = vld [vmem:[#allocation8 + $0xb0] sm:$0xff]  ;;  %v401_v32 = vld [vmem:[#allocation8 + $0x1a8] sm:$0xff]  ;;  %v367_v34 = vld [vmem:[#allocation8 + $0x98] sm:$0xff] }
  0x34   :  { %307 = vmatmul.f32.vlgmr.msra.gmra.mxu3 %v83_v62  ;;  %183 = vmatpush.msra.mxu0 %v98_v63  ;;  %v402_v33 = vld [vmem:[#allocation8 + $0x1b0] sm:$0xff]  ;;  %v368_v35 = vld [vmem:[#allocation8 + $0xa0] sm:$0xff]  ;;  %v399_v36 = vld [vmem:[#allocation8 + $0x198] sm:$0xff] }
  0x35   :  { %184 = vmatmul.f32.vlgmr.msra.gmra.mxu0 %v82_v61  ;;  %224 = vmatpush.msra.mxu1 %v130_v1  ;;  %v400_v37 = vld [vmem:[#allocation8 + $0x1a0] sm:$0xff]  ;;  %v365_v38 = vld [vmem:[#allocation8 + $0x88] sm:$0xff]  ;;  %v366_v39 = vld [vmem:[#allocation8 + $0x90] sm:$0xff] }
  0x36   :  { %225 = vmatmul.f32.vlgmr.msra.gmra.mxu1 %v83_v62  ;;  %500 = vmatpush.msrb.mxu2 %v379_v10  ;;  %v397_v40 = vld [vmem:[#allocation8 + $0x188] sm:$0xff]  ;;  %v398_v41 = vld [vmem:[#allocation8 + $0x190] sm:$0xff]  ;;  %v94_v42 = vld [vmem:[#allocation2 + $0x60] sm:$0xff] }
  0x37   :  { %541 = vmatpush.msrb.mxu3 %v411_v11  ;;  %418 = vmatpush.msrb.mxu0 %v378_v13  ;;  %v95_v43 = vld [vmem:[#allocation2 + $0x68] sm:$0xff]  ;;  %v363_v44 = vld [vmem:[#allocation8 + $0x78] sm:$0xff]  ;;  %v362_v49 = vld [vmem:[#allocation8 + $0x70] sm:$0xff] }
  0x38   :  { %459 = vmatpush.msrb.mxu1 %v410_v15  ;;  %501 = vmatpush.msrb.mxu2 %v377_v12  ;;  %v364_v45 = vld [vmem:[#allocation8 + $0x80] sm:$0xff]  ;;  %v395_v46 = vld [vmem:[#allocation8 + $0x178] sm:$0xff]  ;;  %v361_v48 = vld [vmem:[#allocation8 + $0x68] sm:$0xff] }
  0x39   :  { %542 = vmatpush.msrb.mxu3 %v409_v14  ;;  %419 = vmatpush.msrb.mxu0 %v376_v17  ;;  %v396_v47 = vld [vmem:[#allocation8 + $0x180] sm:$0xff]  ;;  %v393_v50 = vld [vmem:[#allocation8 + $0x168] sm:$0xff]  ;;  %v394_v51 = vld [vmem:[#allocation8 + $0x170] sm:$0xff] }
  0x3a   :  { %502 = vmatpush.msrb.mxu2 %v375_v16  ;;  %460 = vmatpush.msrb.mxu1 %v408_v19  ;;  %v359_v52 = vld [vmem:[#allocation8 + $0x58] sm:$0xff]  ;;  %v360_v53 = vld [vmem:[#allocation8 + $0x60] sm:$0xff]  ;;  %v96_v56 = vld [vmem:[#allocation2 + $0x70] sm:$0xff] }
  0x3b   :  { %269 = vmatmul.f32.gmra.mxu2 %v84_v2  ;;  %543 = vmatpush.msrb.mxu3 %v407_v18  ;;  %v391_v54 = vld [vmem:[#allocation8 + $0x158] sm:$0xff]  ;;  %v392_v55 = vld [vmem:[#allocation8 + $0x160] sm:$0xff]  ;;  %v357_v58 = vld [vmem:[#allocation8 + $0x48] sm:$0xff] }
  0x3c   :  { %310 = vmatmul.f32.gmra.mxu3 %v85_v3  ;;  %503 = vmatpush.msrb.mxu2 %v373_v20  ;;  %v97_v57 = vld [vmem:[#allocation2 + $0x78] sm:$0xff]  ;;  %v389_v60 = vld [vmem:[#allocation8 + $0x148] sm:$0xff]  ;;  %v356_v63 = vld [vmem:[#allocation8 + $0x40] sm:$0xff] }
  0x3d   :  { %187 = vmatmul.f32.gmra.mxu0 %v84_v2  ;;  %544 = vmatpush.msrb.mxu3 %v405_v22  ;;  %v358_v59 = vld [vmem:[#allocation8 + $0x50] sm:$0xff]  ;;  %v355_v62 = vld [vmem:[#allocation8 + $0x38] sm:$0xff]  ;;  %v388_v1 = vld [vmem:[#allocation8 + $0x140] sm:$0xff] }
  0x3e   :  { %228 = vmatmul.f32.gmra.mxu1 %v85_v3  ;;  %420 = vmatpush.msrb.mxu0 %v374_v21  ;;  %v390_v61 = vld [vmem:[#allocation8 + $0x150] sm:$0xff]  ;;  %v387_v0 = vld [vmem:[#allocation8 + $0x138] sm:$0xff]  ;;  %v353_v2 = vld [vmem:[#allocation8 + $0x28] sm:$0xff] }
  0x3f   :  { %461 = vmatpush.msrb.mxu1 %v406_v23  ;;  %504 = vmatpush.msrb.mxu2 %v371_v24  ;;  %v354_v3 = vld [vmem:[#allocation8 + $0x30] sm:$0xff]  ;;  %v349_v10 = vld [vmem:[#allocation8 + $0x8] sm:$0xff]  ;;  %v348_v12 = vld [vmem:[#allocation8] sm:$0xff] }
  0x40   :  { %421 = vmatpush.msrb.mxu0 %v372_v25  ;;  %545 = vmatpush.msrb.mxu3 %v403_v26  ;;  %v350_v11 = vld [vmem:[#allocation8 + $0x10] sm:$0xff]  ;;  %v381_v14 = vld [vmem:[#allocation8 + $0x108] sm:$0xff]  ;;  %v380_v15 = vld [vmem:[#allocation8 + $0x100] sm:$0xff] }
  0x41   :  { %462 = vmatpush.msrb.mxu1 %v404_v27  ;;  %505 = vmatpush.msrb.mxu2 %v369_v30  ;;  %v382_v13 = vld [vmem:[#allocation8 + $0x110] sm:$0xff]  ;;  %v162_v16 = vld [vmem:[#allocation7] sm:$0x3] }
  0x42   :  { %422 = vmatpush.msrb.mxu0 %v370_v31  ;;  %546 = vmatpush.msrb.mxu3 %v401_v32  ;;  %v812_v17 = vperm.slane %v162_v16, 0  ;;  %v815_v20 = vperm.slane %v162_v16, 1 }
  0x43   :  { %272 = vmatmul.f32.gmra.mxu2 %v86_v4  ;;  %463 = vmatpush.msrb.mxu1 %v402_v33 }
  0x44   :  { %313 = vmatmul.f32.gmra.mxu3 %v87_v5  ;;  %506 = vmatpush.msrb.mxu2 %v367_v34 }
  0x45   :  { %190 = vmatmul.f32.gmra.mxu0 %v86_v4  ;;  %547 = vmatpush.msrb.mxu3 %v399_v36  ;;  %v385_v4 = vld [vmem:[#allocation8 + $0x128] sm:$0xff] }
  0x46   :  { %231 = vmatmul.f32.gmra.mxu1 %v87_v5  ;;  %423 = vmatpush.msrb.mxu0 %v368_v35  ;;  %v386_v5 = vld [vmem:[#allocation8 + $0x130] sm:$0xff] }
  0x47   :  { %464 = vmatpush.msrb.mxu1 %v400_v37  ;;  %507 = vmatpush.msrb.mxu2 %v365_v38 }
  0x48   :  { %424 = vmatpush.msrb.mxu0 %v366_v39  ;;  %548 = vmatpush.msrb.mxu3 %v397_v40 }
  0x49   :  { %465 = vmatpush.msrb.mxu1 %v398_v41  ;;  %508 = vmatpush.msrb.mxu2 %v363_v44 }
  0x4a   :  { %425 = vmatpush.msrb.mxu0 %v364_v45  ;;  %549 = vmatpush.msrb.mxu3 %v395_v46 }
  0x4b   :  { %275 = vmatmul.f32.gmra.mxu2 %v88_v6  ;;  %466 = vmatpush.msrb.mxu1 %v396_v47 }
  0x4c   :  { %316 = vmatmul.f32.gmra.mxu3 %v89_v7  ;;  %509 = vmatpush.msrb.mxu2 %v361_v48 }
  0x4d   :  { %193 = vmatmul.f32.gmra.mxu0 %v88_v6  ;;  %550 = vmatpush.msrb.mxu3 %v393_v50  ;;  %v351_v6 = vld [vmem:[#allocation8 + $0x18] sm:$0xff] }
  0x4e   :  { %234 = vmatmul.f32.gmra.mxu1 %v89_v7  ;;  %426 = vmatpush.msrb.mxu0 %v362_v49  ;;  %v352_v7 = vld [vmem:[#allocation8 + $0x20] sm:$0xff] }
  0x4f   :  { %467 = vmatpush.msrb.mxu1 %v394_v51  ;;  %510 = vmatpush.msrb.mxu2 %v359_v52 }
  0x50   :  { %427 = vmatpush.msrb.mxu0 %v360_v53  ;;  %551 = vmatpush.msrb.mxu3 %v391_v54 }
  0x51   :  { %468 = vmatpush.msrb.mxu1 %v392_v55  ;;  %511 = vmatpush.msrb.mxu2 %v357_v58 }
  0x52   :  { %428 = vmatpush.msrb.mxu0 %v358_v59  ;;  %552 = vmatpush.msrb.mxu3 %v389_v60 }
  0x53   :  { %278 = vmatmul.f32.gmra.mxu2 %v90_v8  ;;  %469 = vmatpush.msrb.mxu1 %v390_v61 }
  0x54   :  { %319 = vmatmul.f32.gmra.mxu3 %v91_v9  ;;  %512 = vmatpush.msrb.mxu2 %v355_v62 }
  0x55   :  { %196 = vmatmul.f32.gmra.mxu0 %v90_v8  ;;  %553 = vmatpush.msrb.mxu3 %v387_v0  ;;  %v383_v8 = vld [vmem:[#allocation8 + $0x118] sm:$0xff] }
  0x56   :  { %237 = vmatmul.f32.gmra.mxu1 %v91_v9  ;;  %429 = vmatpush.msrb.mxu0 %v356_v63  ;;  %v384_v9 = vld [vmem:[#allocation8 + $0x120] sm:$0xff] }
  0x57   :  { %470 = vmatpush.msrb.mxu1 %v388_v1  ;;  %513 = vmatpush.msrb.mxu2 %v353_v2 }
  0x58   :  { %430 = vmatpush.msrb.mxu0 %v354_v3  ;;  %554 = vmatpush.msrb.mxu3 %v385_v4 }
  0x59   :  { %471 = vmatpush.msrb.mxu1 %v386_v5  ;;  %514 = vmatpush.msrb.mxu2 %v351_v6 }
  0x5a   :  { %431 = vmatpush.msrb.mxu0 %v352_v7  ;;  %555 = vmatpush.msrb.mxu3 %v383_v8 }
  0x5b   :  { %281 = vmatmul.f32.gmra.mxu2 %v92_v28  ;;  %472 = vmatpush.msrb.mxu1 %v384_v9 }
  0x5c   :  { %322 = vmatmul.f32.gmra.mxu3 %v93_v29  ;;  %515 = vmatpush.msrb.mxu2 %v349_v10 }
  0x5d   :  { %199 = vmatmul.f32.gmra.mxu0 %v92_v28  ;;  %473 = vmatpush.msrb.mxu1 %v382_v13 }
  0x5e   :  { %240 = vmatmul.f32.gmra.mxu1 %v93_v29  ;;  %432 = vmatpush.msrb.mxu0 %v350_v11 }
  0x5f   :  { %556 = vmatpush.msrb.mxu3 %v381_v14  ;;  %474 = vmatpush.msrb.mxu1 %v380_v15 }
  0x60   :  { %433 = vmatpush.msrb.mxu0 %v348_v12 }
  0x63   :  { %284 = vmatmul.f32.gmra.mxu2 %v94_v42 }
  0x64   :  { %325 = vmatmul.f32.gmra.mxu3 %v95_v43 }
  0x65   :  { %202 = vmatmul.f32.gmra.mxu0 %v94_v42 }
  0x66   :  { %243 = vmatmul.f32.gmra.mxu1 %v95_v43 }
  0x6b   :  { %287 = vmatmul.f32.gmra.mxu2 %v96_v56 }
  0x6c   :  { %328 = vmatmul.f32.gmra.mxu3 %v97_v57 }
  0x6d   :  { %205 = vmatmul.f32.gmra.mxu0 %v96_v56 }
  0x6e   :  { %246 = vmatmul.f32.gmra.mxu1 %v97_v57 }
  0xb2   :  { %v185_v18 = vpop.f32.mrf.mxu0 }
  0xb3   :  { %v186_v19 = vadd.f32 %v185_v18, %v812_v17  ;;  %v226_v21 = vpop.f32.mrf.mxu1 }
  0xb5   :  { %v227_v22 = vadd.f32 %v226_v21, %v186_v19 }
  0xb6   :  { %v267_v23 = vpop.f32.mrf.mxu2 }
  0xb7   :  { %v308_v24 = vpop.f32.mrf.mxu3  ;;  %v332_v25 = vmax.f32 %v227_v22, 0.0  ;;  %v268_v26 = vadd.f32 %v267_v23, %v815_v20 }
  0xb9   :  { %v309_v27 = vadd.f32 %v308_v24, %v268_v26  ;;  %434 = vmatmul.f32.vlgmr.msrb.gmra.mxu0 %v332_v25  ;;  %516 = vmatmul.f32.vlgmr.msrb.gmra.mxu2 %v332_v25 }
  0xba   :  { %v188_v28 = vpop.f32.mrf.mxu0 }
  0xbb   :  { %v333_v29 = vmax.f32 %v309_v27, 0.0  ;;  %v189_v30 = vadd.f32 %v188_v28, %v812_v17  ;;  %v229_v31 = vpop.f32.mrf.mxu1 }
  0xbd   :  { %475 = vmatmul.f32.vlgmr.msrb.gmra.mxu1 %v333_v29  ;;  %557 = vmatmul.f32.vlgmr.msrb.gmra.mxu3 %v333_v29  ;;  %v230_v32 = vadd.f32 %v229_v31, %v189_v30 }
  0xbe   :  { %v270_v33 = vpop.f32.mrf.mxu2 }
  0xbf   :  { %v311_v34 = vpop.f32.mrf.mxu3  ;;  %v334_v35 = vmax.f32 %v230_v32, 0.0  ;;  %v271_v36 = vadd.f32 %v270_v33, %v815_v20 }
  0xc1   :  { %v312_v37 = vadd.f32 %v311_v34, %v271_v36  ;;  %437 = vmatmul.f32.gmra.mxu0 %v334_v35  ;;  %519 = vmatmul.f32.gmra.mxu2 %v334_v35 }
  0xc2   :  { %v191_v38 = vpop.f32.mrf.mxu0 }
  0xc3   :  { %v335_v39 = vmax.f32 %v312_v37, 0.0  ;;  %v192_v40 = vadd.f32 %v191_v38, %v812_v17  ;;  %v232_v41 = vpop.f32.mrf.mxu1  ;;  %v412_v37 = vld [vmem:[%s865_s4] sm:$0x3]  ;;  %s760_s4 = smov [#allocation10]  }
  0xc4   :  { %s602_s13 = sshll.u32 %s760_s4, 4  ;;  %s603_s13 = int_to_ptr.vmem [resolvable:$true] %s602_s13 }
  0xc5   :  { %478 = vmatmul.f32.gmra.mxu1 %v335_v39  ;;  %560 = vmatmul.f32.gmra.mxu3 %v335_v39  ;;  %v233_v42 = vadd.f32 %v232_v41, %v192_v40  ;;  %v838_v40 = vperm.slane %v412_v37, 1 }
  0xc6   :  { %v273_v43 = vpop.f32.mrf.mxu2 }
  0xc7   :  { %v314_v44 = vpop.f32.mrf.mxu3  ;;  %v336_v45 = vmax.f32 %v233_v42, 0.0  ;;  %v274_v46 = vadd.f32 %v273_v43, %v815_v20 }
  0xc9   :  { %v315_v47 = vadd.f32 %v314_v44, %v274_v46  ;;  %440 = vmatmul.f32.gmra.mxu0 %v336_v45  ;;  %522 = vmatmul.f32.gmra.mxu2 %v336_v45 }
  0xca   :  { %v194_v48 = vpop.f32.mrf.mxu0 }
  0xcb   :  { %v337_v49 = vmax.f32 %v315_v47, 0.0  ;;  %v195_v50 = vadd.f32 %v194_v48, %v812_v17  ;;  %v235_v51 = vpop.f32.mrf.mxu1 }
  0xcd   :  { %481 = vmatmul.f32.gmra.mxu1 %v337_v49  ;;  %563 = vmatmul.f32.gmra.mxu3 %v337_v49  ;;  %v236_v52 = vadd.f32 %v235_v51, %v195_v50 }
  0xce   :  { %v276_v53 = vpop.f32.mrf.mxu2 }
  0xcf   :  { %v317_v54 = vpop.f32.mrf.mxu3  ;;  %v338_v55 = vmax.f32 %v236_v52, 0.0  ;;  %v277_v56 = vadd.f32 %v276_v53, %v815_v20 }
  0xd1   :  { %v318_v57 = vadd.f32 %v317_v54, %v277_v56  ;;  %443 = vmatmul.f32.gmra.mxu0 %v338_v55  ;;  %525 = vmatmul.f32.gmra.mxu2 %v338_v55 }
  0xd2   :  { %v197_v58 = vpop.f32.mrf.mxu0 }
  0xd3   :  { %v339_v59 = vmax.f32 %v318_v57, 0.0  ;;  %v198_v60 = vadd.f32 %v197_v58, %v812_v17  ;;  %v238_v61 = vpop.f32.mrf.mxu1 }
  0xd5   :  { %484 = vmatmul.f32.gmra.mxu1 %v339_v59  ;;  %566 = vmatmul.f32.gmra.mxu3 %v339_v59  ;;  %v239_v62 = vadd.f32 %v238_v61, %v198_v60 }
  0xd6   :  { %v279_v63 = vpop.f32.mrf.mxu2 }
  0xd7   :  { %v320_v0 = vpop.f32.mrf.mxu3  ;;  %v340_v1 = vmax.f32 %v239_v62, 0.0  ;;  %v280_v2 = vadd.f32 %v279_v63, %v815_v20 }
  0xd9   :  { %v321_v3 = vadd.f32 %v320_v0, %v280_v2  ;;  %446 = vmatmul.f32.gmra.mxu0 %v340_v1  ;;  %528 = vmatmul.f32.gmra.mxu2 %v340_v1 }
  0xda   :  { %v200_v4 = vpop.f32.mrf.mxu0 }
  0xdb   :  { %v341_v5 = vmax.f32 %v321_v3, 0.0  ;;  %v201_v6 = vadd.f32 %v200_v4, %v812_v17  ;;  %v241_v7 = vpop.f32.mrf.mxu1 }
  0xdd   :  { %487 = vmatmul.f32.gmra.mxu1 %v341_v5  ;;  %569 = vmatmul.f32.gmra.mxu3 %v341_v5  ;;  %v242_v8 = vadd.f32 %v241_v7, %v201_v6 }
  0xde   :  { %v282_v9 = vpop.f32.mrf.mxu2 }
  0xdf   :  { %v323_v10 = vpop.f32.mrf.mxu3  ;;  %v342_v11 = vmax.f32 %v242_v8, 0.0  ;;  %v283_v12 = vadd.f32 %v282_v9, %v815_v20 }
  0xe1   :  { %v324_v13 = vadd.f32 %v323_v10, %v283_v12  ;;  %449 = vmatmul.f32.gmra.mxu0 %v342_v11  ;;  %531 = vmatmul.f32.gmra.mxu2 %v342_v11 }
  0xe2   :  { %v203_v14 = vpop.f32.mrf.mxu0 }
  0xe3   :  { %v343_v15 = vmax.f32 %v324_v13, 0.0  ;;  %v204_v16 = vadd.f32 %v203_v14, %v812_v17  ;;  %v244_v18 = vpop.f32.mrf.mxu1 }
  0xe5   :  { %490 = vmatmul.f32.gmra.mxu1 %v343_v15  ;;  %572 = vmatmul.f32.gmra.mxu3 %v343_v15  ;;  %v245_v19 = vadd.f32 %v244_v18, %v204_v16 }
  0xe6   :  { %v285_v21 = vpop.f32.mrf.mxu2 }
  0xe7   :  { %v326_v22 = vpop.f32.mrf.mxu3  ;;  %v344_v23 = vmax.f32 %v245_v19, 0.0  ;;  %v286_v24 = vadd.f32 %v285_v21, %v815_v20 }
  0xe9   :  { %v327_v25 = vadd.f32 %v326_v22, %v286_v24  ;;  %452 = vmatmul.f32.gmra.mxu0 %v344_v23  ;;  %534 = vmatmul.f32.gmra.mxu2 %v344_v23 }
  0xea   :  { %v206_v26 = vpop.f32.mrf.mxu0 }
  0xeb   :  { %v345_v27 = vmax.f32 %v327_v25, 0.0  ;;  %v207_v28 = vadd.f32 %v206_v26, %v812_v17  ;;  %v247_v29 = vpop.f32.mrf.mxu1  ;;  %v835_v17 = vperm.slane %v412_v37, 0 }
  0xed   :  { %493 = vmatmul.f32.gmra.mxu1 %v345_v27  ;;  %575 = vmatmul.f32.gmra.mxu3 %v345_v27  ;;  %v248_v30 = vadd.f32 %v247_v29, %v207_v28 }
  0xee   :  { %v288_v31 = vpop.f32.mrf.mxu2 }
  0xef   :  { %v329_v32 = vpop.f32.mrf.mxu3  ;;  %v346_v33 = vmax.f32 %v248_v30, 0.0  ;;  %v289_v34 = vadd.f32 %v288_v31, %v815_v20 }
  0xf1   :  { %v330_v35 = vadd.f32 %v329_v32, %v289_v34  ;;  %455 = vmatmul.f32.gmra.mxu0 %v346_v33  ;;  %537 = vmatmul.f32.gmra.mxu2 %v346_v33 }
  0xf3   :  { %v347_v36 = vmax.f32 %v330_v35, 0.0 }
  0xf5   :  { %496 = vmatmul.f32.gmra.mxu1 %v347_v36  ;;  %578 = vmatmul.f32.gmra.mxu3 %v347_v36 }
 0x136   :  { %v435_v38 = vpop.f32.mrf.mxu0 }
 0x137   :  { %v436_v39 = vadd.f32 %v435_v38, %v835_v17 }
 0x13a   :  { %v476_v41 = vpop.f32.mrf.mxu1 }
 0x13b   :  { %v477_v42 = vadd.f32 %v476_v41, %v436_v39 }
 0x13c   :  { %v517_v20 = vpop.f32.mrf.mxu2 }
 0x13d   :  { %582 = vst [vmem:[#allocation10] sm:$0xff] %v477_v42  ;;  %v518_v43 = vadd.f32 %v517_v20, %v838_v40 }
 0x13e   :  { %v438_v44 = vpop.f32.mrf.mxu0 }
 0x13f   :  { %v439_v45 = vadd.f32 %v438_v44, %v835_v17 }
 0x140   :  { %v558_v46 = vpop.f32.mrf.mxu3 }
 0x141   :  { %v559_v47 = vadd.f32 %v558_v46, %v518_v43 }
 0x142   :  { %v479_v48 = vpop.f32.mrf.mxu1 }
 0x143   :  { %583 = vst [vmem:[#allocation10 + $0x8] sm:$0xff] %v559_v47  ;;  %v480_v49 = vadd.f32 %v479_v48, %v439_v45 }
 0x144   :  { %v520_v50 = vpop.f32.mrf.mxu2 }
 0x145   :  { %584 = vst [vmem:[#allocation10 + $0x10] sm:$0xff] %v480_v49  ;;  %v521_v51 = vadd.f32 %v520_v50, %v838_v40 }
 0x146   :  { %v441_v52 = vpop.f32.mrf.mxu0 }
 0x147   :  { %v442_v53 = vadd.f32 %v441_v52, %v835_v17 }
 0x148   :  { %v561_v54 = vpop.f32.mrf.mxu3 }
 0x149   :  { %v562_v55 = vadd.f32 %v561_v54, %v521_v51 }
 0x14a   :  { %v482_v56 = vpop.f32.mrf.mxu1 }
 0x14b   :  { %585 = vst [vmem:[#allocation10 + $0x18] sm:$0xff] %v562_v55  ;;  %v483_v57 = vadd.f32 %v482_v56, %v442_v53 }
 0x14c   :  { %v523_v58 = vpop.f32.mrf.mxu2 }
 0x14d   :  { %586 = vst [vmem:[#allocation10 + $0x20] sm:$0xff] %v483_v57  ;;  %v524_v59 = vadd.f32 %v523_v58, %v838_v40 }
 0x14e   :  { %v444_v60 = vpop.f32.mrf.mxu0 }
 0x14f   :  { %v445_v61 = vadd.f32 %v444_v60, %v835_v17 }
 0x150   :  { %v564_v62 = vpop.f32.mrf.mxu3 }
 0x151   :  { %v565_v63 = vadd.f32 %v564_v62, %v524_v59 }
 0x152   :  { %v485_v0 = vpop.f32.mrf.mxu1 }
 0x153   :  { %587 = vst [vmem:[#allocation10 + $0x28] sm:$0xff] %v565_v63  ;;  %v486_v1 = vadd.f32 %v485_v0, %v445_v61 }
 0x154   :  { %v526_v2 = vpop.f32.mrf.mxu2 }
 0x155   :  { %588 = vst [vmem:[#allocation10 + $0x30] sm:$0xff] %v486_v1  ;;  %v527_v3 = vadd.f32 %v526_v2, %v838_v40 }
 0x156   :  { %v447_v4 = vpop.f32.mrf.mxu0 }
 0x157   :  { %v448_v5 = vadd.f32 %v447_v4, %v835_v17 }
 0x158   :  { %v567_v6 = vpop.f32.mrf.mxu3 }
 0x159   :  { %v568_v7 = vadd.f32 %v567_v6, %v527_v3 }
 0x15a   :  { %v488_v8 = vpop.f32.mrf.mxu1 }
 0x15b   :  { %589 = vst [vmem:[#allocation10 + $0x38] sm:$0xff] %v568_v7  ;;  %v489_v9 = vadd.f32 %v488_v8, %v448_v5 }
 0x15c   :  { %v529_v10 = vpop.f32.mrf.mxu2 }
 0x15d   :  { %590 = vst [vmem:[#allocation10 + $0x40] sm:$0xff] %v489_v9  ;;  %v530_v11 = vadd.f32 %v529_v10, %v838_v40 }
 0x15e   :  { %v450_v12 = vpop.f32.mrf.mxu0 }
 0x15f   :  { %v451_v13 = vadd.f32 %v450_v12, %v835_v17 }
 0x160   :  { %v570_v14 = vpop.f32.mrf.mxu3 }
 0x161   :  { %v571_v15 = vadd.f32 %v570_v14, %v530_v11 }
 0x162   :  { %v491_v16 = vpop.f32.mrf.mxu1 }
 0x163   :  { %591 = vst [vmem:[#allocation10 + $0x48] sm:$0xff] %v571_v15  ;;  %v492_v18 = vadd.f32 %v491_v16, %v451_v13 }
 0x164   :  { %v532_v19 = vpop.f32.mrf.mxu2 }
 0x165   :  { %592 = vst [vmem:[#allocation10 + $0x50] sm:$0xff] %v492_v18  ;;  %v533_v21 = vadd.f32 %v532_v19, %v838_v40 }
 0x166   :  { %v453_v22 = vpop.f32.mrf.mxu0 }
 0x167   :  { %v454_v23 = vadd.f32 %v453_v22, %v835_v17 }
 0x168   :  { %v573_v24 = vpop.f32.mrf.mxu3 }
 0x169   :  { %v574_v25 = vadd.f32 %v573_v24, %v533_v21 }
 0x16a   :  { %v494_v26 = vpop.f32.mrf.mxu1 }
 0x16b   :  { %593 = vst [vmem:[#allocation10 + $0x58] sm:$0xff] %v574_v25  ;;  %v495_v27 = vadd.f32 %v494_v26, %v454_v23 }
 0x16c   :  { %v535_v28 = vpop.f32.mrf.mxu2 }
 0x16d   :  { %594 = vst [vmem:[#allocation10 + $0x60] sm:$0xff] %v495_v27  ;;  %v536_v29 = vadd.f32 %v535_v28, %v838_v40 }
 0x16e   :  { %v456_v30 = vpop.f32.mrf.mxu0 }
 0x16f   :  { %v457_v31 = vadd.f32 %v456_v30, %v835_v17 }
 0x170   :  { %v576_v32 = vpop.f32.mrf.mxu3 }
 0x171   :  { %v577_v33 = vadd.f32 %v576_v32, %v536_v29 }
 0x172   :  { %v497_v34 = vpop.f32.mrf.mxu1 }
 0x173   :  { %595 = vst [vmem:[#allocation10 + $0x68] sm:$0xff] %v577_v33  ;;  %v498_v35 = vadd.f32 %v497_v34, %v457_v31 }
 0x174   :  { %v538_v36 = vpop.f32.mrf.mxu2 }
 0x175   :  { %596 = vst [vmem:[#allocation10 + $0x70] sm:$0xff] %v498_v35  ;;  %v539_v37 = vadd.f32 %v538_v36, %v838_v40 }
 0x178   :  { %v579_v38 = vpop.f32.mrf.mxu3 }
 0x179   :  { %v580_v39 = vadd.f32 %v579_v38, %v539_v37 }
 0x17b   :  { %597 = vst [vmem:[#allocation10 + $0x78] sm:$0xff] %v580_v39 }
 0x17c   :  { %610 = dma.vmem_to_hbm [thread:$0]  %s603_s13, 2048, %s605_s16, [#allocation4], %s755_s26, %s755_s26, %s756_s27  }
 0x17d   :  { %752 = dma.done.wait [#allocation4], 2048  }
 0x17e   :  { %753 = vsyncadd [#allocation4], 4294965248 }
 0x17f   :  { %615 = vsyncpa [#allocation3], 1 }
 0x180   :  { %616 = vsyncpa [#allocation6], 1 }
 0x181   :  { %617 = vsyncpa [#allocation9], 1 }
 0x182   :  { %618 = vsyncpa [#allocation4], 1 }

</bundles_post_ra>
